<compile_context>
chip_gen: v5e
topology: v5e:2x2
jax: 0.10.0
libtpu: 0.0.40
codegen_flags: <defaults>
</compile_context>

<pallas_src>
import jax
import jax.numpy as jnp
from jax.experimental import pallas as pl
from jax.experimental.pallas import tpu as pltpu


def _round_up(x, m):
    return ((x + m - 1) // m) * m


def fused_concat_mlp_kernel(uid_ref, bid_ref, up_t_ref, bp_t_ref, bw2_ref, b2_ref, o_ref):
    """One grid step handles a (1, TILE_B) slab of the batch (batch on lanes).

    uid_ref / bid_ref : (1, TILE_B) int32   streamed ids
    up_t_ref          : (H, U_pad)  bf16    resident (user_emb @ W1[:E]).T, vocab zero-padded
    bp_t_ref          : (H, Bk_pad) bf16    resident (book_emb @ W1[E:]).T, vocab zero-padded
    bw2_ref           : (H, 2)      f32     resident, col 0 = b1, col 1 = w2
    b2_ref            : (1, 1)      f32     SMEM scalar
    o_ref             : (1, TILE_B) f32     lane-dense output
    """
    u_pad = up_t_ref.shape[1]
    bk_pad = bp_t_ref.shape[1]
    tile_b = uid_ref.shape[1]

    uid = uid_ref[...]
    bid = bid_ref[...]

    # One-hot gather as an MXU matmul: column j selects row ids[j] of the folded table.
    onehot_u = jnp.where(
        jax.lax.broadcasted_iota(jnp.int32, (u_pad, tile_b), 0) == uid, 1.0, 0.0
    ).astype(jnp.bfloat16)
    onehot_b = jnp.where(
        jax.lax.broadcasted_iota(jnp.int32, (bk_pad, tile_b), 0) == bid, 1.0, 0.0
    ).astype(jnp.bfloat16)

    # Hidden layer with batch on lanes, f32 accumulation:
    #   h = W1[:E].T @ u_gathered + W1[E:].T @ b_gathered   (tables pre-folded through W1).
    h = jnp.dot(up_t_ref[...], onehot_u, preferred_element_type=jnp.float32)
    h = h + jnp.dot(bp_t_ref[...], onehot_b, preferred_element_type=jnp.float32)

    # Elementwise epilogue in f32 (safe on v5e which lacks bf16 VPU/EUP).
    bw2 = bw2_ref[...]                              # (H, 2)
    h = h + bw2[:, 0:1]                             # + b1, broadcast across lanes
    h = jnp.where(h > 0, h, 0.01 * h)               # LeakyReLU (PyTorch default slope 0.01)
    # Output projection as VPU multiply + sublane reduction (no N=1 MXU matmul).
    raw = jnp.sum(h * bw2[:, 1:2], axis=0, keepdims=True) + b2_ref[0, 0]   # (1, TILE_B)
    o_ref[...] = 1.0 + 4.0 * jax.nn.sigmoid(raw)


def _tile_and_vmem_caps():
    """Gen-specific caps: v5e/v6e have 128 MiB VMEM, v7x only 64 MiB."""
    try:
        vmem_bytes = int(pltpu.get_tpu_info().vmem_capacity_bytes)
    except Exception:
        vmem_bytes = 64 * 1024 * 1024                       # conservative (v7x-sized) default
    if vmem_bytes >= 96 * 1024 * 1024:                      # v5e / v6e
        return 8192, 64 * 1024 * 1024
    return 4096, 40 * 1024 * 1024                           # v7x / unknown


def concat_model_forward(user_id, book_id, params, max_tile_b=None):
    """params: user_emb [U,E], book_emb [Bk,E], w1 [2E,H], b1 [H], w2 [H,1], b2 [1]."""
    user_emb = params["user_emb"]
    book_emb = params["book_emb"]
    w1, b1, w2, b2 = params["w1"], params["b1"], params["w2"], params["b2"]

    U, E = user_emb.shape
    Bk = book_emb.shape[0]
    H = w1.shape[1]
    B = user_id.shape[0]

    # Fold each embedding table through its half of W1 once (batch-independent, tiny):
    #   concat(u, b) @ W1 = u @ W1[:E] + b @ W1[E:].
    hi = jax.lax.Precision.HIGHEST
    up = jnp.dot(user_emb, w1[:E], precision=hi)            # (U, H) f32
    bp = jnp.dot(book_emb, w1[E:], precision=hi)            # (Bk, H) f32

    # Transposed + vocab padded to a lane multiple; bf16 matmul operands (f32 accumulate
    # in-kernel).  Padded rows are zero and never selected by valid ids.
    u_pad = _round_up(U, 128)
    bk_pad = _round_up(Bk, 128)
    up_t = jnp.pad(up.T, ((0, 0), (0, u_pad - U))).astype(jnp.bfloat16)     # (H, U_pad)
    bp_t = jnp.pad(bp.T, ((0, 0), (0, bk_pad - Bk))).astype(jnp.bfloat16)   # (H, Bk_pad)

    bw2 = jnp.stack(
        [b1.astype(jnp.float32), w2.reshape(H).astype(jnp.float32)], axis=1)  # (H, 2)
    b2s = b2.reshape(1, 1).astype(jnp.float32)

    # Batch tiling: large tiles amortize the ~0.35us/step overhead, but no bigger than
    # ceil(B/2) (rounded to 128) so v7x's two TensorCores both get a grid step.
    tile_cap, vmem_limit = _tile_and_vmem_caps()
    if max_tile_b is not None:
        tile_cap = max_tile_b
    tile_b = max(128, min(tile_cap, _round_up(pl.cdiv(B, 2), 128)))
    b_pad = _round_up(B, tile_b)
    grid = (b_pad // tile_b,)

    # Pad only the cheap id vectors (4 B/elem); pad ids are 0 (valid row) and the
    # corresponding outputs are sliced off below.
    uid = jnp.pad(user_id.astype(jnp.int32), (0, b_pad - B)).reshape(1, b_pad)
    bid = jnp.pad(book_id.astype(jnp.int32), (0, b_pad - B)).reshape(1, b_pad)

    cost = pl.CostEstimate(
        flops=2 * b_pad * H * (u_pad + bk_pad) + 6 * b_pad * H,
        transcendentals=b_pad,
        bytes_accessed=(2 * b_pad * 4              # ids in
                        + b_pad * 4                # output
                        + 2 * H * (u_pad + bk_pad) # resident bf16 folded tables
                        + H * 2 * 4 + 4),          # packed [b1|w2] + b2
    )

    out = pl.pallas_call(
        fused_concat_mlp_kernel,
        out_shape=jax.ShapeDtypeStruct((1, b_pad), jnp.float32),
        grid=grid,
        in_specs=[
            pl.BlockSpec((1, tile_b), lambda i: (0, i)),        # streamed user ids
            pl.BlockSpec((1, tile_b), lambda i: (0, i)),        # streamed book ids
            pl.BlockSpec((H, u_pad), lambda i: (0, 0)),         # resident folded user table
            pl.BlockSpec((H, bk_pad), lambda i: (0, 0)),        # resident folded book table
            pl.BlockSpec((H, 2), lambda i: (0, 0)),             # packed [b1 | w2]
            pl.BlockSpec((1, 1), lambda i: (0, 0),
                         memory_space=pltpu.MemorySpace.SMEM),  # b2 scalar
        ],
        out_specs=pl.BlockSpec((1, tile_b), lambda i: (0, i)),
        compiler_params=pltpu.CompilerParams(
            dimension_semantics=("parallel",),
            vmem_limit_bytes=vmem_limit,
        ),
        cost_estimate=cost,
    )(uid, bid, up_t, bp_t, bw2, b2s)

    # Lane-dense (1, B_pad) slab back to the module's (B, 1) shape.
    return out[0, :B].reshape(B, 1)


def init_params(key, num_users, num_books, embedding_dim, hidden_dim):
    """Deterministic init mirroring the PyTorch module's shapes.
    Embeddings: xavier_uniform. Linear layers: uniform(-1/sqrt(fan_in), 1/sqrt(fan_in))."""
    k1, k2, k3, k4, k5, k6 = jax.random.split(key, 6)

    def xavier(k, shape):
        fan_in, fan_out = shape[0], shape[1]
        a = jnp.sqrt(6.0 / (fan_in + fan_out))
        return jax.random.uniform(k, shape, jnp.float32, -a, a)

    def linear_init(kw, kb, fan_in, fan_out):
        bound = 1.0 / jnp.sqrt(fan_in)
        w = jax.random.uniform(kw, (fan_in, fan_out), jnp.float32, -bound, bound)
        b = jax.random.uniform(kb, (fan_out,), jnp.float32, -bound, bound)
        return w, b

    user_emb = xavier(k1, (num_users, embedding_dim))
    book_emb = xavier(k2, (num_books, embedding_dim))
    w1, b1 = linear_init(k3, k4, 2 * embedding_dim, hidden_dim)
    w2, b2 = linear_init(k5, k6, hidden_dim, 1)
    return {"user_emb": user_emb, "book_emb": book_emb,
            "w1": w1, "b1": b1, "w2": w2, "b2": b2}


def _reference(user_id, book_id, params):
    u = jnp.take(params["user_emb"], user_id, axis=0)
    bk = jnp.take(params["book_emb"], book_id, axis=0)
    inp = jnp.concatenate([u, bk], axis=1)
    h = inp @ params["w1"] + params["b1"]
    h = jnp.where(h > 0, h, 0.01 * h)
    return 1.0 + 4.0 * jax.nn.sigmoid(h @ params["w2"] + params["b2"].reshape(1, 1))


if __name__ == "__main__":
    num_users = 100
    num_books = 200
    embedding_dim = 32
    hidden_dim = 128

    key = jax.random.PRNGKey(0)
    kp, ku, kb = jax.random.split(key, 3)
    params = init_params(kp, num_users, num_books, embedding_dim, hidden_dim)

    # Small batch (single grid step).
    batch = 8
    user_id = jax.random.randint(ku, (batch,), 0, num_users, dtype=jnp.int32)
    book_id = jax.random.randint(kb, (batch,), 0, num_books, dtype=jnp.int32)

    out = jax.block_until_ready(concat_model_forward(user_id, book_id, params))
    assert out.shape == (batch, 1)
    assert bool(jnp.all(out > 1.0)) and bool(jnp.all(out < 5.0))
    ref = _reference(user_id, book_id, params)
    assert bool(jnp.allclose(out, ref, atol=2e-2, rtol=0.0)), (
        f"max abs diff = {float(jnp.max(jnp.abs(out - ref)))}")

    # Ragged batch exercising the multi-tile grid + id padding path.
    batch2 = 300
    ku2, kb2 = jax.random.split(jax.random.PRNGKey(1))
    user_id2 = jax.random.randint(ku2, (batch2,), 0, num_users, dtype=jnp.int32)
    book_id2 = jax.random.randint(kb2, (batch2,), 0, num_books, dtype=jnp.int32)

    out2 = jax.block_until_ready(concat_model_forward(user_id2, book_id2, params))
    ref2 = _reference(user_id2, book_id2, params)
    assert out2.shape == (batch2, 1)
    assert bool(jnp.allclose(out2, ref2, atol=2e-2, rtol=0.0)), (
        f"max abs diff = {float(jnp.max(jnp.abs(out2 - ref2)))}")

    print("KERNEL_OK")
</pallas_src>

<mosaic_0001>
module attributes {stable_mosaic.version = 11 : i64} {
  func.func @fused_concat_mlp_kernel(%arg0: i32, %arg1: memref<1x128xi32, #tpu.memory_space<vmem>>, %arg2: memref<1x128xi32, #tpu.memory_space<vmem>>, %arg3: memref<128x128xbf16, #tpu.memory_space<vmem>>, %arg4: memref<128x256xbf16, #tpu.memory_space<vmem>>, %arg5: memref<128x2xf32, #tpu.memory_space<vmem>>, %arg6: memref<1x1xf32, #tpu.memory_space<smem>>, %arg7: memref<1x128xf32, #tpu.memory_space<vmem>>) attributes {dimension_semantics = [#tpu.dimension_semantics<parallel>], iteration_bounds = array<i64: 1>, scalar_prefetch = 0 : i64, scratch_operands = 0 : i64, tpu.core_type = #tpu.core_type<tc>, window_params = [{transform_indices = @transform_0, window_bounds = array<i64: 1, 128>}, {transform_indices = @transform_1, window_bounds = array<i64: 1, 128>}, {pipeline_mode = #tpu.pipeline_mode<synchronous>, transform_indices = @transform_2, window_bounds = array<i64: 128, 128>}, {pipeline_mode = #tpu.pipeline_mode<synchronous>, transform_indices = @transform_3, window_bounds = array<i64: 128, 256>}, {pipeline_mode = #tpu.pipeline_mode<synchronous>, transform_indices = @transform_4, window_bounds = array<i64: 128, 2>}, {transform_indices = @transform_5, window_bounds = array<i64: 1, 1>}, {transform_indices = @transform_6, window_bounds = array<i64: 1, 128>}]} {
    %c0 = arith.constant 0 : index
    %c0_0 = arith.constant 0 : index
    %0 = vector.load %arg1[%c0, %c0_0] : memref<1x128xi32, #tpu.memory_space<vmem>>, vector<1x128xi32>
    %c0_1 = arith.constant 0 : index
    %c0_2 = arith.constant 0 : index
    %1 = vector.load %arg2[%c0_1, %c0_2] : memref<1x128xi32, #tpu.memory_space<vmem>>, vector<1x128xi32>
    %2 = tpu.iota {dimensions = array<i32: 0>} : vector<128x128xi32>
    %3 = vector.broadcast %0 : vector<1x128xi32> to vector<128x128xi32>
    %4 = arith.cmpi eq, %2, %3 : vector<128x128xi32>
    %cst = arith.constant 1.000000e+00 : f32
    %cst_3 = arith.constant 0.000000e+00 : f32
    %5 = vector.broadcast %cst : f32 to vector<128x128xf32>
    %6 = vector.broadcast %cst_3 : f32 to vector<128x128xf32>
    %7 = arith.select %4, %5, %6 : vector<128x128xi1>, vector<128x128xf32>
    %8 = arith.truncf %7 : vector<128x128xf32> to vector<128x128xbf16>
    %9 = tpu.iota {dimensions = array<i32: 0>} : vector<256x128xi32>
    %10 = vector.broadcast %1 : vector<1x128xi32> to vector<256x128xi32>
    %11 = arith.cmpi eq, %9, %10 : vector<256x128xi32>
    %cst_4 = arith.constant 1.000000e+00 : f32
    %cst_5 = arith.constant 0.000000e+00 : f32
    %12 = vector.broadcast %cst_4 : f32 to vector<256x128xf32>
    %13 = vector.broadcast %cst_5 : f32 to vector<256x128xf32>
    %14 = arith.select %11, %12, %13 : vector<256x128xi1>, vector<256x128xf32>
    %15 = arith.truncf %14 : vector<256x128xf32> to vector<256x128xbf16>
    %c0_6 = arith.constant 0 : index
    %c0_7 = arith.constant 0 : index
    %16 = vector.load %arg3[%c0_6, %c0_7] : memref<128x128xbf16, #tpu.memory_space<vmem>>, vector<128x128xbf16>
    %cst_8 = arith.constant dense<0.000000e+00> : vector<128x128xf32>
    %17 = tpu.matmul %16, %8, %cst_8 {dimension_numbers = #tpu.dot_dimension_numbers<[1], [0], [0], [1], [0, 0, 1, 1], [], []>} : vector<128x128xbf16>, vector<128x128xbf16>, vector<128x128xf32> -> vector<128x128xf32>
    %c0_9 = arith.constant 0 : index
    %c0_10 = arith.constant 0 : index
    %18 = vector.load %arg4[%c0_9, %c0_10] : memref<128x256xbf16, #tpu.memory_space<vmem>>, vector<128x256xbf16>
    %cst_11 = arith.constant dense<0.000000e+00> : vector<128x128xf32>
    %19 = tpu.matmul %18, %15, %cst_11 {dimension_numbers = #tpu.dot_dimension_numbers<[1], [0], [0], [1], [0, 0, 1, 1], [], []>} : vector<128x256xbf16>, vector<256x128xbf16>, vector<128x128xf32> -> vector<128x128xf32>
    %20 = arith.addf %17, %19 : vector<128x128xf32>
    %c0_12 = arith.constant 0 : index
    %c0_13 = arith.constant 0 : index
    %21 = vector.load %arg5[%c0_12, %c0_13] : memref<128x2xf32, #tpu.memory_space<vmem>>, vector<128x2xf32>
    %22 = vector.extract_strided_slice %21 {offsets = [0, 0], sizes = [128, 1], strides = [1, 1]} : vector<128x2xf32> to vector<128x1xf32>
    %23 = vector.broadcast %22 : vector<128x1xf32> to vector<128x128xf32>
    %24 = arith.addf %20, %23 : vector<128x128xf32>
    %cst_14 = arith.constant 0.000000e+00 : f32
    %25 = vector.broadcast %cst_14 : f32 to vector<128x128xf32>
    %26 = arith.cmpf ogt, %24, %25 : vector<128x128xf32>
    %cst_15 = arith.constant 0.00999999977 : f32
    %27 = vector.broadcast %cst_15 : f32 to vector<128x128xf32>
    %28 = arith.mulf %27, %24 : vector<128x128xf32>
    %29 = arith.select %26, %24, %28 : vector<128x128xi1>, vector<128x128xf32>
    %30 = vector.extract_strided_slice %21 {offsets = [0, 1], sizes = [128, 1], strides = [1, 1]} : vector<128x2xf32> to vector<128x1xf32>
    %31 = vector.broadcast %30 : vector<128x1xf32> to vector<128x128xf32>
    %32 = arith.mulf %29, %31 : vector<128x128xf32>
    %cst_16 = arith.constant dense<0.000000e+00> : vector<128xf32>
    %33 = vector.multi_reduction <add>, %32, %cst_16 [0] : vector<128x128xf32> to vector<128xf32>
    %34 = vector.shape_cast %33 : vector<128xf32> to vector<1x128xf32>
    %c0_17 = arith.constant 0 : index
    %c0_18 = arith.constant 0 : index
    %35 = memref.load %arg6[%c0_17, %c0_18] : memref<1x1xf32, #tpu.memory_space<smem>>
    %36 = vector.broadcast %35 : f32 to vector<1x128xf32>
    %37 = arith.addf %34, %36 : vector<1x128xf32>
    %38 = arith.negf %37 : vector<1x128xf32>
    %39 = math.exp %38 : vector<1x128xf32>
    %cst_19 = arith.constant 1.000000e+00 : f32
    %40 = vector.broadcast %cst_19 : f32 to vector<1x128xf32>
    %41 = arith.addf %40, %39 : vector<1x128xf32>
    %42 = arith.divf %40, %41 : vector<1x128xf32>
    %cst_20 = arith.constant 4.000000e+00 : f32
    %43 = vector.broadcast %cst_20 : f32 to vector<1x128xf32>
    %44 = arith.mulf %43, %42 : vector<1x128xf32>
    %cst_21 = arith.constant 1.000000e+00 : f32
    %45 = vector.broadcast %cst_21 : f32 to vector<1x128xf32>
    %46 = arith.addf %45, %44 : vector<1x128xf32>
    %c0_22 = arith.constant 0 : index
    %c0_23 = arith.constant 0 : index
    %47 = vector.load %arg7[%c0_22, %c0_23] : memref<1x128xf32, #tpu.memory_space<vmem>>, vector<1x128xf32>
    tpu.vector_store %arg7[%c0_22, %c0_23], %46 {strides = array<i32>} : memref<1x128xf32, #tpu.memory_space<vmem>>, vector<1x128xf32>,
    return
  }
  func.func @transform_0(%arg0: i32) -> (i32, i32) {
    %c0_i32 = arith.constant 0 : i32
    %c0_i32_0 = arith.constant 0 : i32
    return %c0_i32, %arg0 : i32, i32
  }
  func.func @transform_1(%arg0: i32) -> (i32, i32) {
    %c0_i32 = arith.constant 0 : i32
    %c0_i32_0 = arith.constant 0 : i32
    return %c0_i32, %arg0 : i32, i32
  }
  func.func @transform_2(%arg0: i32) -> (i32, i32) {
    %c0_i32 = arith.constant 0 : i32
    %c0_i32_0 = arith.constant 0 : i32
    %c0_i32_1 = arith.constant 0 : i32
    return %c0_i32, %c0_i32_0 : i32, i32
  }
  func.func @transform_3(%arg0: i32) -> (i32, i32) {
    %c0_i32 = arith.constant 0 : i32
    %c0_i32_0 = arith.constant 0 : i32
    %c0_i32_1 = arith.constant 0 : i32
    return %c0_i32, %c0_i32_0 : i32, i32
  }
  func.func @transform_4(%arg0: i32) -> (i32, i32) {
    %c0_i32 = arith.constant 0 : i32
    %c0_i32_0 = arith.constant 0 : i32
    %c0_i32_1 = arith.constant 0 : i32
    return %c0_i32, %c0_i32_0 : i32, i32
  }
  func.func @transform_5(%arg0: i32) -> (i32, i32) {
    %c0_i32 = arith.constant 0 : i32
    %c0_i32_0 = arith.constant 0 : i32
    %c0_i32_1 = arith.constant 0 : i32
    return %c0_i32, %c0_i32_0 : i32, i32
  }
  func.func @transform_6(%arg0: i32) -> (i32, i32) {
    %c0_i32 = arith.constant 0 : i32
    %c0_i32_0 = arith.constant 0 : i32
    return %c0_i32, %arg0 : i32, i32
  }
}

</mosaic_0001>

<bundles_post_ra>
// kernel: tpu_custom_call.1
= control target key start
LH: loop header
LB: loop body
LE: loop exit
PB: predicated region body
PF: predicated region fallthrough
CT: control target
= control target key end

     0   :  { %12 = vsyncpa [#allocation4], 0  ;;  %s1672_s0 = inlined_call_operand.vmem [shape: s32[1,128], index: 0, kind: input, shape index: {}]   ;;  %s1673_s1 = inlined_call_operand.vmem [shape: s32[1,128], index: 1, kind: input, shape index: {}]   ;;  %s1674_s2 = inlined_call_operand.hbm [shape: bf16[128,128], index: 2, kind: input, shape index: {}]   ;;  %s1675_s3 = inlined_call_operand.vmem [shape: bf16[128,256], index: 3, kind: input, shape index: {}]   ;;  %s1676_s4 = inlined_call_operand.vmem [shape: f32[128,2], index: 4, kind: input, shape index: {}]   ;;  %s1677_s5 = inlined_call_operand.<no memory space> [shape: f32[1,1], index: 5, kind: input, shape index: {}]   ;;  %s1678_s6 = inlined_call_operand.hbm [shape: f32[1,128], index: 6, kind: output, shape index: {}]  }
   0x1   :  { %13 = vsyncpa [#allocation5], 0  ;;  %s22_s23 = sshll.u32 %s1674_s2, 4  ;;  %s1077_s24 = smov [#allocation3]   ;;  %s23_s23 = int_to_ptr.hbm [resolvable:$true] %s22_s23 }
   0x2   :  { %s24_s25 = sshll.u32 %s1077_s24, 4  ;;  %s1078_s26 = smov 64   ;;  %s25_s25 = int_to_ptr.vmem [resolvable:$true] %s24_s25 }
   0x3   :  { %s1079_s27 = smov 4  }
   0x4   :  { %30 = dma.hbm_to_vmem [thread:$0]  %s23_s23, 1024, %s25_s25, [#allocation4], %s1078_s26, %s1078_s26, %s1079_s27  }
   0x5   :  { %1073 = dma.done.wait [#allocation4], 1024  }
   0x6   :  { %1074 = vsyncadd [#allocation4], 4294966272  ;;  %v43_v0 = vlaneseq  ;;  %v1080_v2 = vmov 0   ;;  %v1081_v3 = vmov 1   ;;  %v1138_v12 = vld [vmem:[%s1673_s1] ss:$0 sm:$0xff] }
   0x7   :  { %1008 = vset.pattern.permute.xlu1 %v1080_v2  ;;  %1012 = vset.pattern.permute.xlu0 %v1081_v3  ;;  %v1143_v13 = vld [vmem:[%s1672_s0] ss:$0 sm:$0xff]  ;;  %v507_v18 = vld [vmem:[%s1676_s4 + $0x10] sm:$0xff]  ;;  %v1082_v19 = vmov 1.0|1.0   ;;  %v1689_v21 = vmov 0 }
   0x8   :  { %v1122_v1 = vshrl.u32 %v43_v0, 7  ;;  %1009 = vset.pattern.permute.xlu2 %v1080_v2  ;;  %533 = vperm.xlu1 %1008, %v507_v18   ;;  %v1693_v27 = vmov 0  ;;  %v1207_v28 = vld [vmem:[%s1676_s4 + $0x18] sm:$0xff]  ;;  %v1697_v32 = vmov 0  ;;  %v1699_v36 = vmov 0  ;;  %v515_v48 = vld [vmem:[%s1676_s4 + $0x50] sm:$0xff] }
   0x9   :  { %674 = vperm.xlu0 %1012, %v507_v18   ;;  %v512_v35 = vld [vmem:[%s1676_s4 + $0x38] sm:$0xff]  ;;  %v1701_v39 = vmov 0  ;;  %v1703_v42 = vmov 0  ;;  %v1705_v45 = vmov 0  ;;  %v1314_v49 = vld [vmem:[%s1676_s4 + $0x20] sm:$0xff]  ;;  %v1707_v50 = vmov 0 }
   0xa   :  { %v58_v4 = vadd.s32 112, %v1122_v1  ;;  %v59_v5 = vadd.s32 120, %v1122_v1  ;;  %v115_v6 = vadd.s32 240, %v1122_v1  ;;  %v116_v7 = vadd.s32 248, %v1122_v1  ;;  %543 = vperm.xlu2 %1009, %v1314_v49   ;;  %v810_v57 = vld [vmem:[%s1675_s3] sm:$0xf] }
   0xb   :  { %v56_v8 = vadd.s32 96, %v1122_v1  ;;  %v57_v9 = vadd.s32 104, %v1122_v1  ;;  %v113_v10 = vadd.s32 224, %v1122_v1  ;;  %v114_v11 = vadd.s32 232, %v1122_v1  ;;  %v962_v58 = vld [vmem:[%s1675_s3 + $0x4] sm:$0xf0] }
   0xc   :  { %v54_v14 = vadd.s32 80, %v1122_v1  ;;  %v55_v15 = vadd.s32 88, %v1122_v1  ;;  %v111_v16 = vadd.s32 208, %v1122_v1  ;;  %v112_v17 = vadd.s32 216, %v1122_v1  ;;  %v858_v59 = vld [vmem:[%s1675_s3 + $0x60] sm:$0xf] }
   0xd   :  { %vm132_vm0 = vcmp.eq.s32.totalorder %v58_v4, %v1138_v12  ;;  %vm133_vm1 = vcmp.eq.s32.totalorder %v59_v5, %v1138_v12  ;;  %vm148_vm2 = vcmp.eq.s32.totalorder %v115_v6, %v1138_v12  ;;  %vm149_vm3 = vcmp.eq.s32.totalorder %v116_v7, %v1138_v12  ;;  %v974_v60 = vld [vmem:[%s1675_s3 + $0x64] sm:$0xf0]  ;;  %v961_v61 = vld [vmem:[%s1675_s3 + $0x4] sm:$0xf]  ;;  %v812_v62 = vld [vmem:[%s1675_s3 + $0x8] sm:$0xf0] }
   0xe   :  { %vm872_vm4 = vmpackc.low %vm133_vm1, %vm132_vm0  ;;  %vm75_vm5 = vcmp.eq.s32.totalorder %v58_v4, %v1143_v13  ;;  %vm76_vm6 = vcmp.eq.s32.totalorder %v59_v5, %v1143_v13  ;;  %vm130_vm7 = vcmp.eq.s32.totalorder %v56_v8, %v1138_v12  ;;  %vm131_vm8 = vcmp.eq.s32.totalorder %v57_v9, %v1138_v12  ;;  %v510_v63 = vld [vmem:[%s1676_s4 + $0x28] sm:$0xff]  ;;  %v505_v6 = vld [vmem:[%s1676_s4] sm:$0xff]  ;;  %s798_s23 = sshll.u32 %s1678_s6, 4  ;;  %s799_s23 = int_to_ptr.hbm [resolvable:$true] %s798_s23 }
   0xf   :  { %873 = vmatpush.bf16.msk.msra.mxu0 %vm872_vm4, %v1082_v19  ;;  %977 = vmatpush.bf16.msk.msra.mxu3 %vm872_vm4, %v1082_v19  ;;  %vm1162_vm9 = vmpackc.low %vm149_vm3, %vm148_vm2  ;;  %vm146_vm10 = vcmp.eq.s32.totalorder %v113_v10, %v1138_v12  ;;  %vm147_vm11 = vcmp.eq.s32.totalorder %v114_v11, %v1138_v12  ;;  %vm73_vm13 = vcmp.eq.s32.totalorder %v56_v8, %v1143_v13  ;;  %v52_v22 = vadd.s32 64, %v1122_v1  ;;  %v953_v8 = vld [vmem:[#allocation3] sm:$0xff]  ;;  %v506_v10 = vld [vmem:[%s1676_s4 + $0x8] sm:$0xff] }
  0x10   :  { %889 = vmatpush.bf16.msk.msra.mxu1 %vm1162_vm9, %v1082_v19  ;;  %vm1171_vm12 = vmpackc.low %vm76_vm6, %vm75_vm5  ;;  %vm74_vm14 = vcmp.eq.s32.totalorder %v57_v9, %v1143_v13  ;;  %vm128_vm0 = vcmp.eq.s32.totalorder %v54_v14, %v1138_v12  ;;  %vm129_vm1 = vcmp.eq.s32.totalorder %v55_v15, %v1138_v12  ;;  %v53_v23 = vadd.s32 72, %v1122_v1  ;;  %538 = vperm.xlu1 %1008, %v1207_v28   ;;  %v513_v9 = vld [vmem:[%s1676_s4 + $0x40] sm:$0xff]  ;;  %v818_v11 = vld [vmem:[%s1675_s3 + $0x10] sm:$0xf] }
  0x11   :  { %v1690_v21 = vsel %vm1171_vm12, 4294967295, %v1689_v21  ;;  %937 = vmatpush.bf16.msk.msra.mxu2 %vm1171_vm12, %v1082_v19  ;;  %vm874_vm15 = vmpackc.low %vm131_vm8, %vm130_vm7  ;;  %vm144_vm3 = vcmp.eq.s32.totalorder %v111_v16, %v1138_v12  ;;  %vm145_vm4 = vcmp.eq.s32.totalorder %v112_v17, %v1138_v12  ;;  %v109_v25 = vadd.s32 192, %v1122_v1  ;;  %694 = vperm.xlu0 %1012, %v512_v35   ;;  %v963_v16 = vld [vmem:[%s1675_s3 + $0x14] sm:$0xf]  ;;  %v820_v17 = vld [vmem:[%s1675_s3 + $0x18] sm:$0xf0] }
  0x12   :  { %vm1184_vm2 = vmpackc.low %vm147_vm11, %vm146_vm10  ;;  %v110_v26 = vadd.s32 200, %v1122_v1  ;;  %vm71_vm6 = vcmp.eq.s32.totalorder %v54_v14, %v1143_v13  ;;  %vm72_vm7 = vcmp.eq.s32.totalorder %v55_v15, %v1143_v13  ;;  %vm126_vm11 = vcmp.eq.s32.totalorder %v52_v22, %v1138_v12  ;;  %548 = vperm.xlu2 %1009, %v510_v63   ;;  %v866_v14 = vld [vmem:[%s1675_s3 + $0x70] sm:$0xf]  ;;  %v976_v15 = vld [vmem:[%s1675_s3 + $0x74] sm:$0xf0] }
  0x13   :  { %875 = vmatpush.bf16.msk.msra.mxu0 %vm874_vm15, %v1082_v19  ;;  %978 = vmatpush.bf16.msk.msra.mxu3 %vm874_vm15, %v1082_v19  ;;  %vm1198_vm5 = vmpackc.low %vm74_vm14, %vm73_vm13  ;;  %vm127_vm13 = vcmp.eq.s32.totalorder %v53_v23, %v1138_v12  ;;  %v50_v30 = vadd.s32 48, %v1122_v1  ;;  %v51_v31 = vadd.s32 56, %v1122_v1  ;;  %vm142_vm15 = vcmp.eq.s32.totalorder %v109_v25, %v1138_v12  ;;  %v954_v24 = vld [vmem:[#allocation3 + $0x8] sm:$0xff]  ;;  %v973_v29 = vld [vmem:[%s1675_s3 + $0x64] sm:$0xf] }
  0x14   :  { %v1694_v27 = vsel %vm1198_vm5, 4294967295, %v1693_v27  ;;  %891 = vmatpush.bf16.msk.msra.mxu1 %vm1184_vm2, %v1082_v19  ;;  %vm876_vm8 = vmpackc.low %vm129_vm1, %vm128_vm0  ;;  %vm143_vm0 = vcmp.eq.s32.totalorder %v110_v26, %v1138_v12  ;;  %v107_v33 = vadd.s32 176, %v1122_v1  ;;  %v108_v34 = vadd.s32 184, %v1122_v1  ;;  %v514_v25 = vld [vmem:[%s1676_s4 + $0x48] sm:$0xff]  ;;  %v826_v26 = vld [vmem:[%s1675_s3 + $0x20] sm:$0xf] }
  0x15   :  { %939 = vmatpush.bf16.msk.msra.mxu2 %vm1198_vm5, %v1082_v19  ;;  %vm1219_vm10 = vmpackc.low %vm145_vm4, %vm144_vm3  ;;  %vm69_vm1 = vcmp.eq.s32.totalorder %v52_v22, %v1143_v13  ;;  %vm70_vm3 = vcmp.eq.s32.totalorder %v53_v23, %v1143_v13  ;;  %v48_v37 = vadd.s32 32, %v1122_v1  ;;  %v49_v38 = vadd.s32 40, %v1122_v1  ;;  %v511_v22 = vld [vmem:[%s1676_s4 + $0x30] sm:$0xff]  ;;  %v844_v52 = vld [vmem:[%s1675_s3 + $0x48] sm:$0xf0] }
  0x16   :  { %vm1227_vm14 = vmpackc.low %vm72_vm7, %vm71_vm6  ;;  %vm124_vm7 = vcmp.eq.s32.totalorder %v50_v30, %v1138_v12  ;;  %v105_v40 = vadd.s32 160, %v1122_v1  ;;  %v106_v41 = vadd.s32 168, %v1122_v1  ;;  %v46_v43 = vadd.s32 16, %v1122_v1  ;;  %v957_v55 = vld [vmem:[#allocation3 + $0x20] sm:$0xff]  ;;  %v850_v56 = vld [vmem:[%s1675_s3 + $0x50] sm:$0xf] }
  0x17   :  { %v1698_v32 = vsel %vm1227_vm14, 4294967295, %v1697_v32  ;;  %877 = vmatpush.bf16.msk.msra.mxu0 %vm876_vm8, %v1082_v19  ;;  %979 = vmatpush.bf16.msk.msra.mxu3 %vm876_vm8, %v1082_v19  ;;  %vm878_vm4 = vmpackc.low %vm127_vm13, %vm126_vm11  ;;  %vm125_vm8 = vcmp.eq.s32.totalorder %v51_v31, %v1138_v12  ;;  %vm140_vm11 = vcmp.eq.s32.totalorder %v107_v33, %v1138_v12  ;;  %vm141_vm13 = vcmp.eq.s32.totalorder %v108_v34, %v1138_v12  ;;  %v828_v33 = vld [vmem:[%s1675_s3 + $0x28] sm:$0xf0] }
  0x18   :  { %893 = vmatpush.bf16.msk.msra.mxu1 %vm1219_vm10, %v1082_v19  ;;  %vm1253_vm6 = vmpackc.low %vm143_vm0, %vm142_vm15  ;;  %vm67_vm15 = vcmp.eq.s32.totalorder %v50_v30, %v1143_v13  ;;  %vm68_vm0 = vcmp.eq.s32.totalorder %v51_v31, %v1143_v13  ;;  %v47_v44 = vadd.s32 24, %v1122_v1  ;;  %v103_v46 = vadd.s32 144, %v1122_v1  ;;  %558 = vperm.xlu1 %1008, %v512_v35   ;;  %v860_v30 = vld [vmem:[%s1675_s3 + $0x68] sm:$0xf0]  ;;  %v965_v31 = vld [vmem:[%s1675_s3 + $0x24] sm:$0xf] }
  0x19   :  { %941 = vmatpush.bf16.msk.msra.mxu2 %vm1227_vm14, %v1082_v19  ;;  %v1700_v36 = vsel %vm1253_vm6, 4294967295, %v1699_v36  ;;  %vm1261_vm5 = vmpackc.low %vm70_vm3, %vm69_vm1  ;;  %vm123_vm14 = vcmp.eq.s32.totalorder %v49_v38, %v1138_v12  ;;  %v104_v47 = vadd.s32 152, %v1122_v1  ;;  %v45_v51 = vadd.s32 8, %v1122_v1  ;;  %706 = vperm.xlu0 %1012, %v515_v48  }
  0x1a   :  { %v1702_v39 = vsel %vm1261_vm5, 4294967295, %v1701_v39  ;;  %vm880_vm1 = vmpackc.low %vm125_vm8, %vm124_vm7  ;;  %vm138_vm7 = vcmp.eq.s32.totalorder %v105_v40, %v1138_v12  ;;  %vm139_vm8 = vcmp.eq.s32.totalorder %v106_v41, %v1138_v12  ;;  %v101_v53 = vadd.s32 128, %v1122_v1  ;;  %563 = vperm.xlu2 %1009, %v513_v9   ;;  %v834_v40 = vld [vmem:[%s1675_s3 + $0x30] sm:$0xf]  ;;  %v975_v41 = vld [vmem:[%s1675_s3 + $0x74] sm:$0xf] }
  0x1b   :  { %879 = vmatpush.bf16.msk.msra.mxu0 %vm878_vm4, %v1082_v19  ;;  %980 = vmatpush.bf16.msk.msra.mxu3 %vm878_vm4, %v1082_v19  ;;  %vm1281_vm3 = vmpackc.low %vm141_vm13, %vm140_vm11  ;;  %vm122_vm4 = vcmp.eq.s32.totalorder %v48_v37, %v1138_v12  ;;  %vm65_vm11 = vcmp.eq.s32.totalorder %v48_v37, %v1143_v13  ;;  %vm66_vm13 = vcmp.eq.s32.totalorder %v49_v38, %v1143_v13  ;;  %v102_v54 = vadd.s32 136, %v1122_v1  ;;  %v955_v38 = vld [vmem:[#allocation3 + $0x10] sm:$0xff] }
  0x1c   :  { %895 = vmatpush.bf16.msk.msra.mxu1 %vm1253_vm6, %v1082_v19  ;;  %v1704_v42 = vsel %vm1281_vm3, 4294967295, %v1703_v42  ;;  %vm1289_vm12 = vmpackc.low %vm68_vm0, %vm67_vm15  ;;  %v811_v4 = vor.u32 %v962_v58, %v810_v57  ;;  %v859_v5 = vor.u32 %v974_v60, %v858_v59  ;;  %v815_v7 = vor.u32 %v961_v61, %v812_v62  ;;  %v972_v57 = vld [vmem:[%s1675_s3 + $0x54] sm:$0xf0]  ;;  %v852_v58 = vld [vmem:[%s1675_s3 + $0x58] sm:$0xf0] }
  0x1d   :  { %943 = vmatpush.bf16.msk.msra.mxu2 %vm1261_vm5, %v1082_v19  ;;  %v1706_v45 = vsel %vm1289_vm12, 4294967295, %v1705_v45  ;;  %vm882_vm15 = vmpackc.low %vm123_vm14, %vm122_vm4  ;;  %vm121_vm5 = vcmp.eq.s32.totalorder %v47_v44, %v1138_v12  ;;  %vm136_vm4 = vcmp.eq.s32.totalorder %v103_v46, %v1138_v12  ;;  %v867_v20 = vor.u32 %v976_v15, %v866_v14  ;;  %v960_v60 = vld [vmem:[#allocation3 + $0x38] sm:$0xff]  ;;  %v958_v61 = vld [vmem:[#allocation3 + $0x28] sm:$0xff] }
  0x1e   :  { %vm1319_vm0 = vmpackc.low %vm139_vm8, %vm138_vm7  ;;  %vm63_vm7 = vcmp.eq.s32.totalorder %v46_v43, %v1143_v13  ;;  %vm64_vm8 = vcmp.eq.s32.totalorder %v47_v44, %v1143_v13  ;;  %v823_v23 = vor.u32 %v963_v16, %v820_v17  ;;  %v863_v35 = vor.u32 %v973_v29, %v860_v30 }
  0x1f   :  { %881 = vmatpush.bf16.msk.msra.mxu0 %vm880_vm1, %v1082_v19  ;;  %981 = vmatpush.bf16.msk.msra.mxu3 %vm880_vm1, %v1082_v19  ;;  %v1708_v50 = vsel %vm1319_vm0, 4294967295, %v1707_v50  ;;  %vm120_vm1 = vcmp.eq.s32.totalorder %v46_v43, %v1138_v12  ;;  %vm1327_vm14 = vmpackc.low %vm66_vm13, %vm65_vm11  ;;  %v831_v37 = vor.u32 %v965_v31, %v828_v33  ;;  %v836_v43 = vld [vmem:[%s1675_s3 + $0x38] sm:$0xf0]  ;;  %v851_v59 = vor.u32 %v972_v57, %v850_v56 }
  0x20   :  { %897 = vmatpush.bf16.msk.msra.mxu1 %vm1281_vm3, %v1082_v19  ;;  %vm884_vm11 = vmpackc.low %vm121_vm5, %vm120_vm1  ;;  %vm119_vm3 = vcmp.eq.s32.totalorder %v45_v51, %v1138_v12  ;;  %vm135_vm5 = vcmp.eq.s32.totalorder %v102_v54, %v1138_v12  ;;  %573 = vperm.xlu1 %1008, %v515_v48   ;;  %vm62_vm1 = vcmp.eq.s32.totalorder %v45_v51, %v1143_v13  ;;  %v956_v48 = vld [vmem:[#allocation3 + $0x18] sm:$0xff]  ;;  %v969_v51 = vld [vmem:[%s1675_s3 + $0x44] sm:$0xf] }
  0x21   :  { %945 = vmatpush.bf16.msk.msra.mxu2 %vm1289_vm12, %v1082_v19  ;;  %vm137_vm12 = vcmp.eq.s32.totalorder %v104_v47, %v1138_v12  ;;  %vm1354_vm6 = vmpackc.low %vm64_vm8, %vm63_vm7  ;;  %1013 = vset.pattern.permute.xlu0 %v1080_v2  ;;  %vm1723_vm8 = vnez %v1694_v27  ;;  %v519_v27 = vld [vmem:[%s1676_s4 + $0x70] sm:$0xff] }
  0x22   :  { %vm1347_vm13 = vmpackc.low %vm137_vm12, %vm136_vm4  ;;  %vm61_vm12 = vcmp.eq.s32.totalorder %v1122_v1, %v1143_v13  ;;  %523 = vperm.xlu0 %1013, %v505_v6   ;;  %v964_v13 = vld [vmem:[%s1675_s3 + $0x14] sm:$0xf0]  ;;  %v959_v54 = vld [vmem:[#allocation3 + $0x30] sm:$0xff] }
  0x23   :  { %883 = vmatpush.bf16.msk.msra.mxu0 %vm882_vm15, %v1082_v19  ;;  %982 = vmatpush.bf16.msk.msra.mxu3 %vm882_vm15, %v1082_v19  ;;  %vm118_vm15 = vcmp.eq.s32.totalorder %v1122_v1, %v1138_v12  ;;  %v819_v18 = vor.u32 %v964_v13, %v818_v11 }
  0x24   :  { %899 = vmatpush.bf16.msk.msra.mxu1 %vm1319_vm0, %v1082_v19  ;;  %vm134_vm0 = vcmp.eq.s32.totalorder %v101_v53, %v1138_v12  ;;  %vm886_vm4 = vmpackc.low %vm119_vm3, %vm118_vm15  ;;  %v1443_v12 = vld [vmem:[%s1676_s4 + $0x58] sm:$0xff]  ;;  %vm1726_vm15 = vnez %v1706_v45 }
  0x25   :  { %947 = vmatpush.bf16.msk.msra.mxu2 %vm1327_vm14, %v1082_v19  ;;  %vm1401_vm7 = vmpackc.low %vm135_vm5, %vm134_vm0  ;;  %578 = vperm.xlu2 %1009, %v1443_v12   ;;  %vm1722_vm0 = vnez %v1690_v21  ;;  %v518_v21 = vld [vmem:[%s1676_s4 + $0x68] sm:$0xff]  ;;  %v520_v45 = vld [vmem:[%s1676_s4 + $0x78] sm:$0xff] }
  0x26   :  { %vm1405_vm3 = vmpackc.low %vm62_vm1, %vm61_vm12 }
  0x27   :  { %885 = vmatpush.bf16.msk.msra.mxu0 %vm884_vm11, %v1082_v19  ;;  %983 = vmatpush.bf16.msk.msra.mxu3 %vm884_vm11, %v1082_v19  ;;  %vm1724_vm11 = vnez %v1698_v32  ;;  %v968_v32 = vld [vmem:[%s1675_s3 + $0x34] sm:$0xf0] }
  0x28   :  { %901 = vmatpush.bf16.msk.msra.mxu1 %vm1347_vm13, %v1082_v19  ;;  %1010 = vset.pattern.permute.xlu1 %v1081_v3  ;;  %v835_v44 = vor.u32 %v968_v32, %v834_v40 }
  0x29   :  { %949 = vmatpush.bf16.msk.msra.mxu2 %vm1354_vm6, %v1082_v19  ;;  %666 = vperm.xlu1 %1010, %v505_v6  }
  0x2a   :  { %528 = vperm.xlu0 %1013, %v506_v10  }
  0x2b   :  { %887 = vmatpush.bf16.msk.msra.mxu0 %vm886_vm4, %v1082_v19  ;;  %984 = vmatpush.bf16.msk.msra.mxu3 %vm886_vm4, %v1082_v19 }
  0x2c   :  { %903 = vmatpush.bf16.msk.msra.mxu1 %vm1401_vm7, %v1082_v19 }
  0x2d   :  { %951 = vmatpush.bf16.msk.msra.mxu2 %vm1405_vm3, %v1082_v19  ;;  %1011 = vset.pattern.permute.xlu2 %v1081_v3 }
  0x2e   :  { %318 = vmatmul.bf16.vlgmr.msra.gmra.mxu0 %v811_v4  ;;  %348 = vmatmul.bf16.vlgmr.msra.gmra.mxu3 %v859_v5 }
  0x2f   :  { %985 = vmatpush.bf16.msk.msrb.mxu3 %vm1162_vm9, %v1082_v19  ;;  %367 = vmatmul.bf16.vlgmr.msra.gmra.mxu1 %v815_v7  ;;  %vm1719_vm9 = vnez %v1700_v36  ;;  %v517_v36 = vld [vmem:[%s1676_s4 + $0x60] sm:$0xff] }
  0x30   :  { %464 = vmatmul.bf16.vlgmr.msra.gmra.mxu2 %v953_v8  ;;  %670 = vperm.xlu2 %1011, %v506_v10  }
  0x31   :  { %678 = vperm.xlu1 %1010, %v1207_v28   ;;  %v966_v28 = vld [vmem:[%s1675_s3 + $0x24] sm:$0xf0] }
  0x32   :  { %553 = vperm.xlu0 %1013, %v511_v22   ;;  %v827_v34 = vor.u32 %v966_v28, %v826_v26 }
  0x33   :  { %986 = vmatpush.bf16.msk.msrb.mxu3 %vm1184_vm2, %v1082_v19  ;;  %vm1720_vm2 = vnez %v1704_v42  ;;  %v868_v42 = vld [vmem:[%s1675_s3 + $0x78] sm:$0xf0] }
  0x34   :  { %v871_v46 = vor.u32 %v975_v41, %v868_v42 }
  0x37   :  { %987 = vmatpush.bf16.msk.msrb.mxu3 %vm1219_vm10, %v1082_v19  ;;  %vm1721_vm10 = vnez %v1708_v50  ;;  %v970_v50 = vld [vmem:[%s1675_s3 + $0x44] sm:$0xf0] }
  0x38   :  { %682 = vperm.xlu2 %1011, %v1314_v49   ;;  %v842_v49 = vld [vmem:[%s1675_s3 + $0x40] sm:$0xf] }
  0x39   :  { %686 = vperm.xlu1 %1010, %v510_v63   ;;  %v843_v53 = vor.u32 %v970_v50, %v842_v49 }
  0x3a   :  { %568 = vperm.xlu0 %1013, %v514_v25  }
  0x3b   :  { %988 = vmatpush.bf16.msk.msrb.mxu3 %vm1719_vm9, %v1082_v19 }
  0x3e   :  { %323 = vmatmul.bf16.gmra.mxu0 %v819_v18  ;;  %353 = vmatmul.bf16.gmra.mxu3 %v867_v20 }
  0x3f   :  { %989 = vmatpush.bf16.msk.msrb.mxu3 %vm1720_vm2, %v1082_v19  ;;  %372 = vmatmul.bf16.gmra.mxu1 %v823_v23 }
  0x40   :  { %469 = vmatmul.bf16.gmra.mxu2 %v954_v24  ;;  %690 = vperm.xlu2 %1011, %v511_v22  }
  0x41   :  { %698 = vperm.xlu1 %1010, %v513_v9  }
  0x42   :  { %583 = vperm.xlu0 %1013, %v517_v36  }
  0x43   :  { %990 = vmatpush.bf16.msk.msrb.mxu3 %vm1721_vm10, %v1082_v19 }
  0x47   :  { %991 = vmatpush.bf16.msk.msrb.mxu3 %vm1347_vm13, %v1082_v19  ;;  %vm1725_vm13 = vnez %v1702_v39  ;;  %v967_v39 = vld [vmem:[%s1675_s3 + $0x34] sm:$0xf] }
  0x48   :  { %702 = vperm.xlu2 %1011, %v514_v25   ;;  %v839_v47 = vor.u32 %v967_v39, %v836_v43 }
  0x49   :  { %1014 = vset.pattern.permute.xlu1 %v1080_v2 }
  0x4a   :  { %588 = vperm.xlu1 %1014, %v518_v21   ;;  %593 = vperm.xlu0 %1013, %v519_v27  }
  0x4b   :  { %992 = vmatpush.bf16.msk.msrb.mxu3 %vm1401_vm7, %v1082_v19 }
  0x4e   :  { %328 = vmatmul.bf16.gmra.mxu0 %v827_v34  ;;  %397 = vmatmul.bf16.vlgmr.msrb.gmra.mxu3 %v863_v35 }
  0x4f   :  { %993 = vmatpush.bf16.msk.msra.mxu3 %vm1722_vm0, %v1082_v19  ;;  %377 = vmatmul.bf16.gmra.mxu1 %v831_v37 }
  0x50   :  { %474 = vmatmul.bf16.gmra.mxu2 %v955_v38  ;;  %710 = vperm.xlu2 %1011, %v1443_v12  }
  0x52   :  { %1015 = vset.pattern.permute.xlu1 %v1081_v3  ;;  %1018 = vset.pattern.permute.xlu0 %v1081_v3 }
  0x53   :  { %994 = vmatpush.bf16.msk.msra.mxu3 %vm1723_vm8, %v1082_v19  ;;  %714 = vperm.xlu1 %1015, %v517_v36  }
  0x54   :  { %726 = vperm.xlu0 %1018, %v520_v45  }
  0x57   :  { %995 = vmatpush.bf16.msk.msra.mxu3 %vm1724_vm11, %v1082_v19 }
  0x58   :  { %1016 = vset.pattern.permute.xlu2 %v1080_v2  ;;  %v971_v2 = vld [vmem:[%s1675_s3 + $0x54] sm:$0xf] }
  0x59   :  { %598 = vperm.xlu2 %1016, %v520_v45  }
  0x5b   :  { %996 = vmatpush.bf16.msk.msra.mxu3 %vm1725_vm13, %v1082_v19  ;;  %718 = vperm.xlu1 %1015, %v518_v21  }
  0x5e   :  { %333 = vmatmul.bf16.gmra.mxu0 %v835_v44  ;;  %402 = vmatmul.bf16.gmra.mxu3 %v871_v46 }
  0x5f   :  { %997 = vmatpush.bf16.msk.msra.mxu3 %vm1726_vm15, %v1082_v19  ;;  %382 = vmatmul.bf16.gmra.mxu1 %v839_v47 }
  0x60   :  { %479 = vmatmul.bf16.gmra.mxu2 %v956_v48 }
  0x61   :  { %1017 = vset.pattern.permute.xlu2 %v1081_v3  ;;  %v855_v3 = vor.u32 %v971_v2, %v852_v58 }
  0x62   :  { %722 = vperm.xlu2 %1017, %v519_v27  }
  0x63   :  { %998 = vmatpush.bf16.msk.msra.mxu3 %vm1327_vm14, %v1082_v19 }
  0x64   :  { %v1589_v9 = vpop.permute.xlu2 %543 }
  0x67   :  { %999 = vmatpush.bf16.msk.msra.mxu3 %vm1354_vm6, %v1082_v19 }
  0x6b   :  { %1000 = vmatpush.bf16.msk.msra.mxu3 %vm1405_vm3, %v1082_v19  ;;  %v847_v19 = vor.u32 %v969_v51, %v844_v52 }
  0x6c   :  { %v1595_v16 = vpop.permute.xlu2 %548 }
  0x6e   :  { %338 = vmatmul.bf16.gmra.mxu0 %v843_v53  ;;  %494 = vmatmul.bf16.vlgmr.msra.gmra.mxu3 %v959_v54 }
  0x6f   :  { %387 = vmatmul.bf16.gmra.mxu1 %v847_v19 }
  0x70   :  { %484 = vmatmul.bf16.gmra.mxu2 %v957_v55 }
  0x74   :  { %v1605_v26 = vpop.permute.xlu2 %563 }
  0x7a   :  { %v534_v6 = vpop.permute.xlu1 %533 }
  0x7b   :  { %v1593_v14 = vpop.permute.xlu0 %674 }
  0x7e   :  { %343 = vmatmul.bf16.gmra.mxu0 %v851_v59  ;;  %499 = vmatmul.bf16.gmra.mxu3 %v960_v60 }
  0x7f   :  { %392 = vmatmul.bf16.gmra.mxu1 %v855_v3  ;;  %v1613_v37 = vpop.permute.xlu2 %578 }
  0x80   :  { %489 = vmatmul.bf16.gmra.mxu2 %v958_v61 }
  0x82   :  { %v539_v15 = vpop.permute.xlu1 %538 }
  0x83   :  { %v1599_v23 = vpop.permute.xlu0 %694 }
  0x8a   :  { %v1601_v24 = vpop.permute.xlu1 %558  ;;  %v671_v39 = vpop.permute.xlu2 %670 }
  0x8b   :  { %v1609_v33 = vpop.permute.xlu0 %706 }
  0x8c   :  { %1727 = vst [vmem:[#allocation9_spill] sm:$0xff] %v1609_v33 }
  0x92   :  { %v1611_v34 = vpop.permute.xlu1 %573  ;;  %v1621_v48 = vpop.permute.xlu2 %682 }
  0x94   :  { %v524_v41 = vpop.permute.xlu0 %523 }
  0x9a   :  { %v1629_v60 = vpop.permute.xlu2 %690 }
  0x9b   :  { %v1617_v42 = vpop.permute.xlu1 %666 }
  0x9c   :  { %v529_v49 = vpop.permute.xlu0 %528 }
  0xa3   :  { %v1623_v45 = vpop.permute.xlu1 %678 }
  0xa4   :  { %v554_v2 = vpop.permute.xlu0 %553 }
  0xab   :  { %v319_v62 = vpop.f32.mrf.mxu0  ;;  %v1627_v56 = vpop.permute.xlu1 %686 }
  0xac   :  { %v368_v63 = vpop.f32.mrf.mxu1 }
  0xad   :  { %v369_v0 = vadd.f32 %v368_v63, %v319_v62 }
  0xb1   :  { %v1587_v1 = vpop.f32.mrf.mxu3 }
  0xb3   :  { %v465_v4 = vpop.f32.mrf.mxu2  ;;  %v321_v5 = vpop.f32.mrf.mxu0 }
  0xb4   :  { %v466_v7 = vadd.f32 %v465_v4, %v369_v0  ;;  %v370_v8 = vpop.f32.mrf.mxu1 }
  0xb5   :  { %v371_v54 = vadd.f32 %v370_v8, %v321_v5 }
  0xb6   :  { %v601_v61 = vadd.f32 %v524_v41, %v466_v7 }
  0xb8   :  { %vm617_vm6 = vcmp.gt.f32.partialorder %v601_v61, 0.0 }
  0xb9   :  { %v1591_v10 = vpop.f32.mrf.mxu3 }
  0xbb   :  { %v467_v11 = vpop.f32.mrf.mxu2  ;;  %v324_v12 = vpop.f32.mrf.mxu0 }
  0xbc   :  { %v373_v13 = vpop.f32.mrf.mxu1  ;;  %v468_v55 = vadd.f32 %v467_v11, %v371_v54  ;;  %v633_v54 = vmul.f32 0.01, %v601_v61 }
  0xbd   :  { %v374_v51 = vadd.f32 %v373_v13, %v324_v12 }
  0xbe   :  { %v602_v62 = vadd.f32 %v529_v49, %v468_v55 }
  0xc0   :  { %v634_v33 = vmul.f32 0.01, %v602_v62  ;;  %vm618_vm14 = vcmp.gt.f32.partialorder %v602_v62, 0.0 }
  0xc1   :  { %v1597_v17 = vpop.f32.mrf.mxu3 }
  0xc3   :  { %v470_v18 = vpop.f32.mrf.mxu2  ;;  %v326_v20 = vpop.f32.mrf.mxu0 }
  0xc4   :  { %v375_v22 = vpop.f32.mrf.mxu1  ;;  %v471_v57 = vadd.f32 %v470_v18, %v374_v51 }
  0xc5   :  { %v376_v58 = vadd.f32 %v375_v22, %v326_v20 }
  0xc6   :  { %v603_v0 = vadd.f32 %v534_v6, %v471_v57 }
  0xc8   :  { %vm619_vm5 = vcmp.gt.f32.partialorder %v603_v0, 0.0  ;;  %v635_v20 = vmul.f32 0.01, %v603_v0 }
  0xc9   :  { %v1603_v25 = vpop.f32.mrf.mxu3 }
  0xca   :  { %v651_v41 = vsel %vm619_vm5, %v603_v0, %v635_v20 }
  0xcb   :  { %v472_v28 = vpop.f32.mrf.mxu2  ;;  %v329_v29 = vpop.f32.mrf.mxu0 }
  0xcc   :  { %v378_v30 = vpop.f32.mrf.mxu1  ;;  %v473_v63 = vadd.f32 %v472_v28, %v376_v58 }
  0xcd   :  { %v379_v59 = vadd.f32 %v378_v30, %v329_v29  ;;  %v1634_v29 = vpop.permute.xlu1 %698  ;;  %v569_v30 = vpop.permute.xlu0 %568 }
  0xce   :  { %v604_v18 = vadd.f32 %v539_v15, %v473_v63  ;;  %v1639_v15 = vpop.permute.xlu2 %702 }
  0xd0   :  { %vm620_vm12 = vcmp.gt.f32.partialorder %v604_v18, 0.0 }
  0xd1   :  { %v1607_v31 = vpop.f32.mrf.mxu3 }
  0xd3   :  { %v475_v35 = vpop.f32.mrf.mxu2  ;;  %v331_v36 = vpop.f32.mrf.mxu0 }
  0xd4   :  { %v380_v38 = vpop.f32.mrf.mxu1  ;;  %v476_v13 = vadd.f32 %v475_v35, %v379_v59  ;;  %v731_v59 = vmul.f32 %v1593_v14, %v651_v41 }
  0xd5   :  { %v381_v5 = vadd.f32 %v380_v38, %v331_v36  ;;  %v650_v36 = vsel %vm618_vm14, %v602_v62, %v634_v33  ;;  %v636_v38 = vmul.f32 0.01, %v604_v18  ;;  %v589_v63 = vpop.permute.xlu1 %588 }
  0xd6   :  { %v605_v22 = vadd.f32 %v1589_v9, %v476_v13 }
  0xd7   :  { %v652_v33 = vsel %vm620_vm12, %v604_v18, %v636_v38 }
  0xd8   :  { %vm621_vm1 = vcmp.gt.f32.partialorder %v605_v22, 0.0 }
  0xd9   :  { %v1615_v21 = vpop.f32.mrf.mxu3 }
  0xdb   :  { %v477_v27 = vpop.f32.mrf.mxu2  ;;  %v334_v40 = vpop.f32.mrf.mxu0 }
  0xdc   :  { %v383_v32 = vpop.f32.mrf.mxu1  ;;  %v478_v51 = vadd.f32 %v477_v27, %v381_v5 }
  0xdd   :  { %v384_v8 = vadd.f32 %v383_v32, %v334_v40  ;;  %v649_v32 = vsel %vm617_vm6, %v601_v61, %v633_v54  ;;  %v399_v54 = vadd.f32 %v1607_v31, %v1587_v1 }
  0xde   :  { %v606_v40 = vadd.f32 %v1595_v16, %v478_v51 }
  0xe0   :  { %v638_v57 = vmul.f32 0.01, %v606_v40  ;;  %vm622_vm4 = vcmp.gt.f32.partialorder %v606_v40, 0.0 }
  0xe1   :  { %v1619_v43 = vpop.f32.mrf.mxu3 }
  0xe2   :  { %v654_v13 = vsel %vm622_vm4, %v606_v40, %v638_v57  ;;  %v404_v40 = vadd.f32 %v1619_v43, %v1597_v17 }
  0xe3   :  { %v480_v44 = vpop.f32.mrf.mxu2  ;;  %v336_v46 = vpop.f32.mrf.mxu0 }
  0xe4   :  { %v385_v47 = vpop.f32.mrf.mxu1  ;;  %v481_v7 = vadd.f32 %v480_v44, %v384_v8  ;;  %v637_v44 = vmul.f32 0.01, %v605_v22 }
  0xe5   :  { %v386_v6 = vadd.f32 %v385_v47, %v336_v46  ;;  %v730_v47 = vmul.f32 %v671_v39, %v650_v36 }
  0xe6   :  { %v607_v49 = vadd.f32 %v554_v2, %v481_v7  ;;  %v653_v61 = vsel %vm621_vm1, %v605_v22, %v637_v44  ;;  %v734_v7 = vmul.f32 %v1627_v56, %v654_v13 }
  0xe8   :  { %v639_v62 = vmul.f32 0.01, %v607_v49  ;;  %vm623_vm7 = vcmp.gt.f32.partialorder %v607_v49, 0.0 }
  0xe9   :  { %v1625_v50 = vpop.f32.mrf.mxu3 }
  0xea   :  { %v655_v18 = vsel %vm623_vm7, %v607_v49, %v639_v62 }
  0xeb   :  { %v482_v52 = vpop.f32.mrf.mxu2  ;;  %v339_v53 = vpop.f32.mrf.mxu0  ;;  %v735_v1 = vmul.f32 %v1629_v60, %v655_v18 }
  0xec   :  { %v388_v19 = vpop.f32.mrf.mxu1  ;;  %v483_v27 = vadd.f32 %v482_v52, %v386_v6  ;;  %v729_v52 = vmul.f32 %v1617_v42, %v649_v32  ;;  %v733_v42 = vmul.f32 %v1621_v48, %v653_v61  ;;  %v715_v60 = vpop.permute.xlu1 %714 }
  0xed   :  { %v389_v28 = vadd.f32 %v388_v19, %v339_v53 }
  0xee   :  { %v608_v16 = vadd.f32 %v1601_v24, %v483_v27  ;;  %v745_v39 = vadd.f32 %v730_v47, %v729_v52  ;;  %v1728_v52 = vld [vmem:[#allocation9_spill] sm:$0xff] }
  0xf0   :  { %v640_v5 = vmul.f32 0.01, %v608_v16  ;;  %v746_v8 = vadd.f32 %v745_v39, %v731_v59  ;;  %vm624_vm3 = vcmp.gt.f32.partialorder %v608_v16, 0.0 }
  0xf1   :  { %v1631_v3 = vpop.f32.mrf.mxu3 }
  0xf2   :  { %v656_v6 = vsel %vm624_vm3, %v608_v16, %v640_v5  ;;  %v496_v48 = vadd.f32 %v1631_v3, %v399_v54  ;;  %v406_v3 = vadd.f32 %v1625_v50, %v1603_v25 }
  0xf3   :  { %v485_v4 = vpop.f32.mrf.mxu2  ;;  %v341_v12 = vpop.f32.mrf.mxu0  ;;  %v736_v32 = vmul.f32 %v1599_v23, %v656_v6 }
  0xf4   :  { %v390_v11 = vpop.f32.mrf.mxu1  ;;  %v486_v55 = vadd.f32 %v485_v4, %v389_v28  ;;  %v732_v4 = vmul.f32 %v1623_v45, %v652_v33  ;;  %v401_v45 = vadd.f32 %v1615_v21, %v1591_v10 }
  0xf5   :  { %v391_v46 = vadd.f32 %v390_v11, %v341_v12  ;;  %v584_v11 = vpop.permute.xlu0 %583 }
  0xf6   :  { %v609_v2 = vadd.f32 %v1605_v26, %v486_v55  ;;  %v711_v26 = vpop.permute.xlu2 %710  ;;  %v747_v22 = vadd.f32 %v746_v8, %v732_v4  ;;  %v613_v41 = vadd.f32 %v584_v11, %v496_v48 }
  0xf8   :  { %v641_v51 = vmul.f32 0.01, %v609_v2  ;;  %vm625_vm9 = vcmp.gt.f32.partialorder %v609_v2, 0.0  ;;  %v748_v36 = vadd.f32 %v747_v22, %v733_v42  ;;  %v645_v50 = vmul.f32 0.01, %v613_v41 }
  0xf9   :  { %v1636_v35 = vpop.f32.mrf.mxu3  ;;  %vm629_vm0 = vcmp.gt.f32.partialorder %v613_v41, 0.0 }
  0xfa   :  { %v657_v27 = vsel %vm625_vm9, %v609_v2, %v641_v51  ;;  %v498_v10 = vadd.f32 %v1636_v35, %v401_v45  ;;  %v749_v56 = vadd.f32 %v748_v36, %v734_v7  ;;  %v661_v2 = vsel %vm629_vm0, %v613_v41, %v645_v50 }
  0xfb   :  { %v487_v9 = vpop.f32.mrf.mxu2  ;;  %v344_v53 = vpop.f32.mrf.mxu0  ;;  %v737_v17 = vmul.f32 %v1634_v29, %v657_v27  ;;  %v767_v36 = vstv %s1677_s5  ;;  %s1083_s5 = smov [#allocation6]  }
  0xfc   :  { %v393_v19 = vpop.f32.mrf.mxu1  ;;  %v488_v58 = vadd.f32 %v487_v9, %v391_v46  ;;  %v750_v55 = vadd.f32 %v749_v56, %v735_v1  ;;  %v614_v46 = vadd.f32 %v589_v63, %v498_v10  ;;  %s796_s20 = sshll.u32 %s1083_s5, 4  ;;  %s797_s20 = int_to_ptr.vmem [resolvable:$true] %s796_s20 }
  0xfd   :  { %v394_v0 = vadd.f32 %v393_v19, %v344_v53  ;;  %v594_v33 = vpop.permute.xlu0 %593 }
  0xfe   :  { %v610_v24 = vadd.f32 %v569_v30, %v488_v58  ;;  %v599_v35 = vpop.permute.xlu2 %598  ;;  %v751_v25 = vadd.f32 %v750_v55, %v736_v32  ;;  %v646_v61 = vmul.f32 0.01, %v614_v46  ;;  %vm630_vm11 = vcmp.gt.f32.partialorder %v614_v46, 0.0 }
 0x100   :  { %v642_v28 = vmul.f32 0.01, %v610_v24  ;;  %vm626_vm2 = vcmp.gt.f32.partialorder %v610_v24, 0.0  ;;  %v752_v58 = vadd.f32 %v751_v25, %v737_v17  ;;  %v662_v13 = vsel %vm630_vm11, %v614_v46, %v646_v61 }
 0x101   :  { %v500_v12 = vpop.f32.mrf.mxu3 }
 0x102   :  { %v658_v9 = vsel %vm626_vm2, %v610_v24, %v642_v28  ;;  %v501_v44 = vadd.f32 %v500_v12, %v404_v40  ;;  %v719_v12 = vpop.permute.xlu1 %718 }
 0x103   :  { %v490_v14 = vpop.f32.mrf.mxu2  ;;  %v346_v31 = vpop.f32.mrf.mxu0  ;;  %v738_v23 = vmul.f32 %v1639_v15, %v658_v9  ;;  %v742_v11 = vmul.f32 %v719_v12, %v662_v13 }
 0x104   :  { %v491_v20 = vadd.f32 %v490_v14, %v394_v0  ;;  %v395_v38 = vpop.f32.mrf.mxu1  ;;  %v615_v57 = vadd.f32 %v594_v33, %v501_v44 }
 0x105   :  { %v396_v49 = vadd.f32 %v395_v38, %v346_v31  ;;  %v753_v63 = vadd.f32 %v752_v58, %v738_v23  ;;  %v727_v54 = vpop.permute.xlu0 %726 }
 0x106   :  { %v611_v30 = vadd.f32 %v1611_v34, %v491_v20  ;;  %v647_v0 = vmul.f32 0.01, %v615_v57  ;;  %vm631_vm13 = vcmp.gt.f32.partialorder %v615_v57, 0.0  ;;  %v723_v8 = vpop.permute.xlu2 %722 }
 0x108   :  { %v643_v21 = vmul.f32 0.01, %v611_v30  ;;  %vm627_vm10 = vcmp.gt.f32.partialorder %v611_v30, 0.0  ;;  %v663_v42 = vsel %vm631_vm13, %v615_v57, %v647_v0 }
 0x109   :  { %v502_v34 = vpop.f32.mrf.mxu3  ;;  %v743_v51 = vmul.f32 %v723_v8, %v663_v42 }
 0x10a   :  { %v659_v47 = vsel %vm627_vm10, %v611_v30, %v643_v21  ;;  %v503_v19 = vadd.f32 %v502_v34, %v406_v3 }
 0x10b   :  { %v492_v43 = vpop.f32.mrf.mxu2  ;;  %v739_v59 = vmul.f32 %v1728_v52, %v659_v47 }
 0x10c   :  { %v493_v53 = vadd.f32 %v492_v43, %v396_v49  ;;  %v616_v62 = vadd.f32 %v599_v35, %v503_v19 }
 0x10d   :  { %v754_v4 = vadd.f32 %v753_v63, %v739_v59 }
 0x10e   :  { %v612_v16 = vadd.f32 %v1613_v37, %v493_v53  ;;  %v648_v5 = vmul.f32 0.01, %v616_v62  ;;  %v741_v37 = vmul.f32 %v715_v60, %v661_v2  ;;  %vm632_vm15 = vcmp.gt.f32.partialorder %v616_v62, 0.0 }
 0x110   :  { %vm628_vm8 = vcmp.gt.f32.partialorder %v612_v16, 0.0  ;;  %v644_v29 = vmul.f32 0.01, %v612_v16  ;;  %v664_v18 = vsel %vm632_vm15, %v616_v62, %v648_v5 }
 0x111   :  { %v744_v22 = vmul.f32 %v727_v54, %v664_v18 }
 0x112   :  { %v660_v39 = vsel %vm628_vm8, %v612_v16, %v644_v29 }
 0x113   :  { %v740_v15 = vmul.f32 %v711_v26, %v660_v39 }
 0x115   :  { %v755_v24 = vadd.f32 %v754_v4, %v740_v15 }
 0x117   :  { %v756_v14 = vadd.f32 %v755_v24, %v741_v37 }
 0x119   :  { %v757_v20 = vadd.f32 %v756_v14, %v742_v11 }
 0x11b   :  { %v758_v45 = vadd.f32 %v757_v20, %v743_v51 }
 0x11d   :  { %v759_v7 = vadd.f32 %v758_v45, %v744_v22 }
 0x11f   :  { %v760_v6 = vrot.slane %v759_v7, 4 }
 0x121   :  { %v761_v48 = vadd.f32 %v760_v6, %v759_v7 }
 0x123   :  { %v762_v26 = vrot.slane %v761_v48, 2 }
 0x125   :  { %v763_v28 = vadd.f32 %v762_v26, %v761_v48 }
 0x127   :  { %v764_v30 = vrot.slane %v763_v28, 1 }
 0x129   :  { %v765_v1 = vadd.f32 %v764_v30, %v763_v28 }
 0x12b   :  { %v768_v31 = vadd.f32 %v767_v36, %v765_v1 }
 0x12d   :  { %v952_v38 = vmul.f32 -1.442695, %v768_v31 }
 0x12f   :  { %1021 = vpow2.f32 %v952_v38 }
 0x135   :  { %v1022_v40 = vpop.eup %1021 }
 0x136   :  { %v772_v27 = vadd.f32 1.0, %v1022_v40 }
 0x138   :  { %1023 = vrcp.f32 %v772_v27  ;;  %v784_v3 = vand.u32 2147483648, %v772_v27  ;;  %v782_v34 = vand.u32 2147483647, %v772_v27  ;;  %vm778_vm14 = vweird.f32 %v772_v27 }
 0x13a   :  { %v785_v60 = vor.u32 1.1754944e-38, %v784_v3  ;;  %vm783_vm12 = vcmp.eq.f32.partialorder %v782_v34, 8.507059e+37 }
 0x13e   :  { %v1024_v10 = vpop.eup %1023 }
 0x13f   :  { %v774_v21 = vmul.f32 %v1024_v10, %v772_v27  ;;  %vm779_vm6 = vweird.f32 %v1024_v10 }
 0x140   :  { %vm780_vm5 = vmor %vm778_vm14, %vm779_vm6 }
 0x141   :  { %v775_v56 = vsub.f32 1.0, %v774_v21 }
 0x143   :  { %v776_v32 = vmul.f32 %v1024_v10, %v775_v56 }
 0x145   :  { %v777_v41 = vadd.f32 %v1024_v10, %v776_v32 }
 0x147   :  { %v781_v9 = vsel %vm780_vm5, %v1024_v10, %v777_v41 }
 0x148   :  { %v786_v44 = vsel %vm783_vm12, %v785_v60, %v781_v9 }
 0x149   :  { %v788_v49 = vmul.f32 4.0, %v786_v44 }
 0x14b   :  { %v789_v55 = vadd.f32 1.0, %v788_v49 }
 0x14d   :  { %790 = vst [vmem:[#allocation6] sm:$0x1] %v789_v55 }
 0x14e   :  { %801 = dma.vmem_to_hbm [thread:$0]  %s797_s20, 16, %s799_s23, [#allocation5]  }
 0x14f   :  { %1075 = dma.done.wait [#allocation5], 16  }
 0x150   :  { %1076 = vsyncadd [#allocation5], 4294967280 }
 0x151   :  { %806 = vsyncpa [#allocation4], 1 }
 0x152   :  { %807 = vsyncpa [#allocation5], 1 }

</bundles_post_ra>
